<compile_context>
chip_gen: v7x
topology: tpu7x:2x2x1
jax: 0.10.0
libtpu: 0.0.40
codegen_flags: <defaults>
</compile_context>

<pallas_src>
import math
import functools

import jax
import jax.numpy as jnp
import numpy as np
from jax.experimental import pallas as pl
from jax.experimental.pallas import tpu as pltpu


# ---------------------------------------------------------------------------
# RoPE tables (host side).  rotate_half's sign pattern concat(-1, +1) is folded
# into the sin table so the kernel only needs a half-swap + 2 mul + add.
# ---------------------------------------------------------------------------
def make_rope_tables(seq_len, head_dim):
    inv_freq = 1.0 / (10000.0 ** (np.arange(0, head_dim, 2, dtype=np.float32)
                                  / head_dim))
    t = np.arange(seq_len, dtype=np.float32)
    freqs = np.einsum("i,j->ij", t, inv_freq)          # (T, D/2)
    emb = np.concatenate([freqs, freqs], axis=-1)      # (T, D)
    cos = np.cos(emb).astype(np.float32)
    sin = np.sin(emb).astype(np.float32)
    sign = np.concatenate([-np.ones(head_dim // 2, np.float32),
                           np.ones(head_dim // 2, np.float32)])
    return jnp.asarray(cos), jnp.asarray(sin * sign[None, :])


def _rope(xh, cos, sin_signed, half):
    """x*cos + rotate_half(x)*sin, with rotate_half's sign folded into sin."""
    swapped = jnp.concatenate([xh[:, half:], xh[:, :half]], axis=-1)
    return xh * cos + swapped * sin_signed


# ---------------------------------------------------------------------------
# Kernel 1: fused QKV projection + RoPE (runs once per token tile).
# ---------------------------------------------------------------------------
def qkv_rope_kernel(x_ref, wq_ref, wk_ref, wv_ref, cos_ref, sin_ref,
                    q_ref, k_ref, v_ref, *, n_heads, num_kv_heads, head_dim):
    D = head_dim
    half = D // 2

    x = x_ref[...]                        # (TT, C)  bf16
    cos = cos_ref[...]                    # (TT, D)  f32
    sin = sin_ref[...]                    # (TT, D)  f32 (sign-folded)

    # bf16 operands, f32 MXU accumulation.  1/sqrt(D) is pre-folded into wq.
    q = jnp.dot(x, wq_ref[...], preferred_element_type=jnp.float32)   # (TT, H*D)
    k = jnp.dot(x, wk_ref[...], preferred_element_type=jnp.float32)   # (TT, KV*D)
    v = jnp.dot(x, wv_ref[...], preferred_element_type=jnp.float32)   # (TT, KV*D)

    # Per-head RoPE in f32, written straight into the bf16 outputs.
    for h in range(n_heads):
        q_ref[:, h * D:(h + 1) * D] = _rope(q[:, h * D:(h + 1) * D],
                                            cos, sin, half).astype(q_ref.dtype)
    for g in range(num_kv_heads):
        k_ref[:, g * D:(g + 1) * D] = _rope(k[:, g * D:(g + 1) * D],
                                            cos, sin, half).astype(k_ref.dtype)
    v_ref[...] = v.astype(v_ref.dtype)


# ---------------------------------------------------------------------------
# Kernel 2: causal flash attention (online softmax over KV blocks with causal
# block skipping) + single fused output projection.
# ---------------------------------------------------------------------------
def attn_wo_kernel(q_ref, k_ref, v_ref, wo_ref, o_ref, *,
                   n_heads, num_kv_heads, head_dim, q_tile, kv_tile):
    D = head_dim
    TQ = q_tile
    TK = kv_tile
    rep = n_heads // num_kv_heads
    M = rep * TQ                          # rep query heads stacked along M
    NEG = jnp.float32(-1e30)              # NaN-safe large-negative mask fill

    qi = pl.program_id(1)
    q_start = qi * TQ
    # Causal block skipping: only key blocks starting at or before the last
    # query position of this tile are visited.
    n_kv_blocks = (q_start + TQ + TK - 1) // TK

    # Row / column position grids for the stacked (rep*TQ, TK) score tile.
    row_pos = q_start + (jax.lax.broadcasted_iota(jnp.int32, (M, TK), 0) % TQ)
    col_off = jax.lax.broadcasted_iota(jnp.int32, (M, TK), 1)

    ctx_heads = []
    for g in range(num_kv_heads):
        # Stack the `rep` query heads sharing KV head g along M: one scores
        # matmul + one PV matmul per KV block for all of them (amortizes the
        # MXU weight push of K/V and bounds live (M, TK) intermediates).
        q_g = jnp.concatenate(
            [q_ref[:, (g * rep + r) * D:(g * rep + r + 1) * D]
             for r in range(rep)], axis=0)                        # (M, D) bf16

        def kv_step(j, carry, g=g, q_g=q_g):
            m_i, l_i, acc = carry
            k_start = pl.multiple_of(j * TK, TK)
            k_blk = k_ref[pl.ds(k_start, TK), g * D:(g + 1) * D]   # (TK, D) bf16
            v_blk = v_ref[pl.ds(k_start, TK), g * D:(g + 1) * D]   # (TK, D) bf16

            s = jax.lax.dot_general(q_g, k_blk, (((1,), (1,)), ((), ())),
                                    preferred_element_type=jnp.float32)  # (M, TK)
            allowed = (j * TK + col_off) <= row_pos
            s = jnp.where(allowed, s, NEG)

            m_new = jnp.maximum(m_i, jnp.max(s, axis=-1, keepdims=True))
            alpha = jnp.exp(m_i - m_new)
            p = jnp.exp(s - m_new)
            l_new = alpha * l_i + jnp.sum(p, axis=-1, keepdims=True)
            acc_new = alpha * acc + jnp.dot(p.astype(v_blk.dtype), v_blk,
                                            preferred_element_type=jnp.float32)
            return m_new, l_new, acc_new

        m0 = jnp.full((M, 1), NEG, jnp.float32)
        l0 = jnp.zeros((M, 1), jnp.float32)
        a0 = jnp.zeros((M, D), jnp.float32)
        _, l_i, acc = jax.lax.fori_loop(0, n_kv_blocks, kv_step, (m0, l0, a0))

        ctx = (acc * pl.reciprocal(l_i, approx=True)).astype(jnp.bfloat16)
        for r in range(rep):                      # output head order g*rep + r
            ctx_heads.append(ctx[r * TQ:(r + 1) * TQ, :])

    # One K=H*D output projection instead of n_heads accumulations into a
    # (TQ, C) f32 buffer: fills the MXU contraction depth and removes the
    # per-head full-width VMEM read-modify-write.
    ctx_all = jnp.concatenate(ctx_heads, axis=-1)                 # (TQ, H*D) bf16
    out = jnp.dot(ctx_all, wo_ref[...], preferred_element_type=jnp.float32)
    o_ref[...] = out.astype(o_ref.dtype)                          # bf16 store


# ---------------------------------------------------------------------------
# Wrapper
# ---------------------------------------------------------------------------
def _vmem_limit_bytes():
    """Generation-aware scoped-VMEM limit (v7x: 64 MiB/TC vs 128 on v5e/v6e)."""
    try:
        cap = pltpu.get_tpu_info().vmem_capacity_bytes
    except Exception:
        cap = 64 * 1024 * 1024
    return int(min(cap * 0.65, 96 * 1024 * 1024))


def attention_forward(x, wq, wk, wv, wo, n_heads, num_kv_heads, q_tile=128):
    """x: (B, T, C); wq/wo: (C, C); wk/wv: (num_kv_heads*D, C), torch (out,in)."""
    B, T, C = x.shape
    assert C % n_heads == 0 and n_heads % num_kv_heads == 0
    D = C // n_heads
    assert D % 2 == 0
    KVD = num_kv_heads * D
    assert wq.shape == (C, C) and wo.shape == (C, C)
    assert wk.shape == (KVD, C) and wv.shape == (KVD, C)

    TQ = min(q_tile, T)
    assert T % TQ == 0 and TQ % 8 == 0
    TT = TQ            # token tile of the QKV/RoPE kernel
    TK = TQ            # key tile of the attention kernel (causal skip assumes TK==TQ grid math)
    NQ = T // TQ

    # Weight prep: (in, out) layout, bf16 operands; 1/sqrt(D) folded into wq
    # (RoPE is linear, so scaling before rotation is equivalent).
    scale = 1.0 / math.sqrt(D)
    wq_t = (wq.T * scale).astype(jnp.bfloat16)
    wk_t = wk.T.astype(jnp.bfloat16)
    wv_t = wv.T.astype(jnp.bfloat16)
    wo_t = wo.T.astype(jnp.bfloat16)
    x_bf = x.astype(jnp.bfloat16)
    cos, sin_signed = make_rope_tables(T, D)

    vmem_limit = _vmem_limit_bytes()

    # Constant-index blocks: single-buffered (no pointless 2x VMEM).
    def const2d(shape):
        return pl.BlockSpec(shape, lambda b, t: (0, 0),
                            pipeline_mode=pl.Buffered(1))

    # ---------------- Kernel 1: QKV projection + RoPE ----------------------
    flops_qkv = 2 * B * T * C * (C + 2 * KVD)
    bytes_qkv = int(x_bf.size * 2 + (wq_t.size + wk_t.size + wv_t.size) * 2
                    + (cos.size + sin_signed.size) * 4
                    + B * T * (C + 2 * KVD) * 2)

    q_all, k_all, v_all = pl.pallas_call(
        functools.partial(qkv_rope_kernel, n_heads=n_heads,
                          num_kv_heads=num_kv_heads, head_dim=D),
        out_shape=(jax.ShapeDtypeStruct((B, T, C), jnp.bfloat16),
                   jax.ShapeDtypeStruct((B, T, KVD), jnp.bfloat16),
                   jax.ShapeDtypeStruct((B, T, KVD), jnp.bfloat16)),
        grid_spec=pltpu.PrefetchScalarGridSpec(
            num_scalar_prefetch=0,
            grid=(B, T // TT),
            in_specs=[
                pl.BlockSpec((pl.Squeezed(), TT, C), lambda b, t: (b, t, 0)),
                const2d(wq_t.shape),
                const2d(wk_t.shape),
                const2d(wv_t.shape),
                pl.BlockSpec((TT, D), lambda b, t: (t, 0)),
                pl.BlockSpec((TT, D), lambda b, t: (t, 0)),
            ],
            out_specs=(
                pl.BlockSpec((pl.Squeezed(), TT, C), lambda b, t: (b, t, 0)),
                pl.BlockSpec((pl.Squeezed(), TT, KVD), lambda b, t: (b, t, 0)),
                pl.BlockSpec((pl.Squeezed(), TT, KVD), lambda b, t: (b, t, 0)),
            )),
        compiler_params=pltpu.CompilerParams(
            dimension_semantics=("parallel", "parallel"),
            vmem_limit_bytes=vmem_limit),
        cost_estimate=pl.CostEstimate(flops=flops_qkv, transcendentals=0,
                                      bytes_accessed=bytes_qkv),
    )(x_bf, wq_t, wk_t, wv_t, cos, sin_signed)

    # ---------------- Kernel 2: causal flash attention + wo ---------------
    kv_visited = T * (T + TQ) // 2        # per batch, per head (causal skipping)
    flops_attn = int(4 * B * n_heads * D * kv_visited + 2 * B * T * C * C)
    bytes_attn = int(B * T * (C + 2 * KVD) * 2 + wo_t.size * 2 + B * T * C * 2)

    return pl.pallas_call(
        functools.partial(attn_wo_kernel, n_heads=n_heads,
                          num_kv_heads=num_kv_heads, head_dim=D,
                          q_tile=TQ, kv_tile=TK),
        out_shape=jax.ShapeDtypeStruct((B, T, C), jnp.bfloat16),
        grid_spec=pltpu.PrefetchScalarGridSpec(
            num_scalar_prefetch=0,
            grid=(B, NQ),
            in_specs=[
                pl.BlockSpec((pl.Squeezed(), TQ, C), lambda b, qi: (b, qi, 0)),
                pl.BlockSpec((pl.Squeezed(), T, KVD), lambda b, qi: (b, 0, 0)),
                pl.BlockSpec((pl.Squeezed(), T, KVD), lambda b, qi: (b, 0, 0)),
                const2d(wo_t.shape),
            ],
            out_specs=pl.BlockSpec((pl.Squeezed(), TQ, C),
                                   lambda b, qi: (b, qi, 0))),
        compiler_params=pltpu.CompilerParams(
            dimension_semantics=("parallel", "parallel"),
            vmem_limit_bytes=vmem_limit),
        cost_estimate=pl.CostEstimate(
            flops=flops_attn,
            transcendentals=int(B * n_heads * kv_visited),
            bytes_accessed=bytes_attn),
    )(q_all, k_all, v_all, wo_t)


# ---------------------------------------------------------------------------
# Pure-JAX (f32) replica of the PyTorch forward, for verification.
# ---------------------------------------------------------------------------
def attention_reference(x, wq, wk, wv, wo, n_heads, num_kv_heads):
    B, T, C = x.shape
    D = C // n_heads
    q = (x @ wq.T).reshape(B, T, n_heads, D).transpose(0, 2, 1, 3)
    k = (x @ wk.T).reshape(B, T, num_kv_heads, D).transpose(0, 2, 1, 3)
    v = (x @ wv.T).reshape(B, T, num_kv_heads, D).transpose(0, 2, 1, 3)

    inv_freq = 1.0 / (10000.0 ** (np.arange(0, D, 2, dtype=np.float32) / D))
    t = np.arange(T, dtype=np.float32)
    freqs = np.einsum("i,j->ij", t, inv_freq)
    emb = np.concatenate([freqs, freqs], axis=-1)
    cos = jnp.asarray(np.cos(emb))[None, None]
    sin = jnp.asarray(np.sin(emb))[None, None]

    def rot_half(a):
        return jnp.concatenate([-a[..., D // 2:], a[..., :D // 2]], axis=-1)

    q = q * cos + rot_half(q) * sin
    k = k * cos + rot_half(k) * sin

    rep = n_heads // num_kv_heads
    k = jnp.repeat(k, rep, axis=1)
    v = jnp.repeat(v, rep, axis=1)

    causal = np.triu(np.ones((T, T), dtype=bool), k=1)
    mask = jnp.asarray(np.where(causal, -np.inf, 0.0).astype(np.float32))

    scores = (q @ k.transpose(0, 1, 3, 2)) / math.sqrt(D) + mask
    attn = jax.nn.softmax(scores, axis=-1)
    out = (attn @ v).transpose(0, 2, 1, 3).reshape(B, T, C)
    return out @ wo.T


if __name__ == "__main__":
    # Shapes consistent with the module: wk/wv output dim//8 features, so
    # num_key_value_heads = n_heads // 8 (GQA with 8x sharing).
    B, T, dim = 2, 16, 128
    n_heads = 8
    num_kv_heads = 1
    kv_dim = dim // 8

    key = jax.random.PRNGKey(0)
    kx, kq, kk, kv_, ko = jax.random.split(key, 5)
    x = jax.random.normal(kx, (B, T, dim), dtype=jnp.float32)
    wq = 0.02 * jax.random.normal(kq, (dim, dim), dtype=jnp.float32)
    wk = 0.02 * jax.random.normal(kk, (kv_dim, dim), dtype=jnp.float32)
    wv = 0.02 * jax.random.normal(kv_, (kv_dim, dim), dtype=jnp.float32)
    wo = 0.02 * jax.random.normal(ko, (dim, dim), dtype=jnp.float32)

    # q_tile=8 -> two query tiles per batch element: exercises the causal
    # block-skipping flash loop (1 kv block for tile 0, 2 for tile 1).
    out = attention_forward(x, wq, wk, wv, wo, n_heads, num_kv_heads, q_tile=8)
    out = jax.block_until_ready(out)

    ref = attention_reference(x, wq, wk, wv, wo, n_heads, num_kv_heads)
    # bf16 operands/output + approx reciprocal -> loosened tolerance.
    np.testing.assert_allclose(np.asarray(out.astype(jnp.float32)),
                               np.asarray(ref), rtol=2e-2, atol=2e-2)
    print("KERNEL_OK")
</pallas_src>

<mosaic_0001>
module attributes {stable_mosaic.version = 11 : i64} {
  func.func @qkv_rope_kernel(%arg0: i32, %arg1: i32, %arg2: memref<1x8x128xbf16, #tpu.memory_space<vmem>>, %arg3: memref<128x128xbf16, #tpu.memory_space<vmem>>, %arg4: memref<128x16xbf16, #tpu.memory_space<vmem>>, %arg5: memref<128x16xbf16, #tpu.memory_space<vmem>>, %arg6: memref<8x16xf32, #tpu.memory_space<vmem>>, %arg7: memref<8x16xf32, #tpu.memory_space<vmem>>, %arg8: memref<1x8x128xbf16, #tpu.memory_space<vmem>>, %arg9: memref<1x8x16xbf16, #tpu.memory_space<vmem>>, %arg10: memref<1x8x16xbf16, #tpu.memory_space<vmem>>) attributes {dimension_semantics = [#tpu.dimension_semantics<parallel>, #tpu.dimension_semantics<parallel>], iteration_bounds = array<i64: 2, 2>, scalar_prefetch = 0 : i64, scratch_operands = 0 : i64, tpu.core_type = #tpu.core_type<tc>, window_params = [{transform_indices = @transform_0, window_bounds = array<i64: 1, 8, 128>}, {pipeline_mode = #tpu.pipeline_mode<synchronous>, transform_indices = @transform_1, window_bounds = array<i64: 128, 128>}, {pipeline_mode = #tpu.pipeline_mode<synchronous>, transform_indices = @transform_2, window_bounds = array<i64: 128, 16>}, {pipeline_mode = #tpu.pipeline_mode<synchronous>, transform_indices = @transform_3, window_bounds = array<i64: 128, 16>}, {transform_indices = @transform_4, window_bounds = array<i64: 8, 16>}, {transform_indices = @transform_5, window_bounds = array<i64: 8, 16>}, {transform_indices = @transform_6, window_bounds = array<i64: 1, 8, 128>}, {transform_indices = @transform_7, window_bounds = array<i64: 1, 8, 16>}, {transform_indices = @transform_8, window_bounds = array<i64: 1, 8, 16>}]} {
    %c0 = arith.constant 0 : index
    %c0_0 = arith.constant 0 : index
    %c0_1 = arith.constant 0 : index
    %0 = vector.load %arg2[%c0, %c0_0, %c0_1] : memref<1x8x128xbf16, #tpu.memory_space<vmem>>, vector<1x8x128xbf16>
    %1 = vector.shape_cast %0 : vector<1x8x128xbf16> to vector<8x128xbf16>
    %c0_2 = arith.constant 0 : index
    %c0_3 = arith.constant 0 : index
    %2 = vector.load %arg6[%c0_2, %c0_3] : memref<8x16xf32, #tpu.memory_space<vmem>>, vector<8x16xf32>
    %c0_4 = arith.constant 0 : index
    %c0_5 = arith.constant 0 : index
    %3 = vector.load %arg7[%c0_4, %c0_5] : memref<8x16xf32, #tpu.memory_space<vmem>>, vector<8x16xf32>
    %c0_6 = arith.constant 0 : index
    %c0_7 = arith.constant 0 : index
    %4 = vector.load %arg3[%c0_6, %c0_7] : memref<128x128xbf16, #tpu.memory_space<vmem>>, vector<128x128xbf16>
    %cst = arith.constant dense<0.000000e+00> : vector<8x128xf32>
    %5 = tpu.matmul %1, %4, %cst {dimension_numbers = #tpu.dot_dimension_numbers<[1], [0], [0], [1], [0, 0, 1, 1], [], []>} : vector<8x128xbf16>, vector<128x128xbf16>, vector<8x128xf32> -> vector<8x128xf32>
    %c0_8 = arith.constant 0 : index
    %c0_9 = arith.constant 0 : index
    %6 = vector.load %arg4[%c0_8, %c0_9] : memref<128x16xbf16, #tpu.memory_space<vmem>>, vector<128x16xbf16>
    %cst_10 = arith.constant dense<0.000000e+00> : vector<8x16xf32>
    %7 = tpu.matmul %1, %6, %cst_10 {dimension_numbers = #tpu.dot_dimension_numbers<[1], [0], [0], [1], [0, 0, 1, 1], [], []>} : vector<8x128xbf16>, vector<128x16xbf16>, vector<8x16xf32> -> vector<8x16xf32>
    %c0_11 = arith.constant 0 : index
    %c0_12 = arith.constant 0 : index
    %8 = vector.load %arg5[%c0_11, %c0_12] : memref<128x16xbf16, #tpu.memory_space<vmem>>, vector<128x16xbf16>
    %cst_13 = arith.constant dense<0.000000e+00> : vector<8x16xf32>
    %9 = tpu.matmul %1, %8, %cst_13 {dimension_numbers = #tpu.dot_dimension_numbers<[1], [0], [0], [1], [0, 0, 1, 1], [], []>} : vector<8x128xbf16>, vector<128x16xbf16>, vector<8x16xf32> -> vector<8x16xf32>
    %10 = vector.extract_strided_slice %5 {offsets = [0, 0], sizes = [8, 16], strides = [1, 1]} : vector<8x128xf32> to vector<8x16xf32>
    %11 = vector.extract_strided_slice %10 {offsets = [0, 8], sizes = [8, 8], strides = [1, 1]} : vector<8x16xf32> to vector<8x8xf32>
    %12 = vector.extract_strided_slice %10 {offsets = [0, 0], sizes = [8, 8], strides = [1, 1]} : vector<8x16xf32> to vector<8x8xf32>
    %13 = tpu.concatenate %11, %12 in 1 : vector<8x8xf32>, vector<8x8xf32> -> vector<8x16xf32>
    %14 = arith.mulf %10, %2 : vector<8x16xf32>
    %15 = arith.mulf %13, %3 : vector<8x16xf32>
    %16 = arith.addf %14, %15 : vector<8x16xf32>
    %17 = arith.truncf %16 : vector<8x16xf32> to vector<8x16xbf16>
    %c0_14 = arith.constant 0 : index
    %c0_15 = arith.constant 0 : index
    %c0_16 = arith.constant 0 : index
    %18 = vector.load %arg8[%c0_14, %c0_15, %c0_16] : memref<1x8x128xbf16, #tpu.memory_space<vmem>>, vector<1x8x16xbf16>
    %19 = vector.shape_cast %18 : vector<1x8x16xbf16> to vector<8x16xbf16>
    %20 = vector.shape_cast %17 : vector<8x16xbf16> to vector<1x8x16xbf16>
    tpu.vector_store %arg8[%c0_14, %c0_15, %c0_16], %20 {strides = array<i32>} : memref<1x8x128xbf16, #tpu.memory_space<vmem>>, vector<1x8x16xbf16>,
    %21 = vector.extract_strided_slice %5 {offsets = [0, 16], sizes = [8, 16], strides = [1, 1]} : vector<8x128xf32> to vector<8x16xf32>
    %22 = vector.extract_strided_slice %21 {offsets = [0, 8], sizes = [8, 8], strides = [1, 1]} : vector<8x16xf32> to vector<8x8xf32>
    %23 = vector.extract_strided_slice %21 {offsets = [0, 0], sizes = [8, 8], strides = [1, 1]} : vector<8x16xf32> to vector<8x8xf32>
    %24 = tpu.concatenate %22, %23 in 1 : vector<8x8xf32>, vector<8x8xf32> -> vector<8x16xf32>
    %25 = arith.mulf %21, %2 : vector<8x16xf32>
    %26 = arith.mulf %24, %3 : vector<8x16xf32>
    %27 = arith.addf %25, %26 : vector<8x16xf32>
    %28 = arith.truncf %27 : vector<8x16xf32> to vector<8x16xbf16>
    %c0_17 = arith.constant 0 : index
    %c0_18 = arith.constant 0 : index
    %c16 = arith.constant 16 : index
    %29 = vector.load %arg8[%c0_17, %c0_18, %c16] : memref<1x8x128xbf16, #tpu.memory_space<vmem>>, vector<1x8x16xbf16>
    %30 = vector.shape_cast %29 : vector<1x8x16xbf16> to vector<8x16xbf16>
    %31 = vector.shape_cast %28 : vector<8x16xbf16> to vector<1x8x16xbf16>
    tpu.vector_store %arg8[%c0_17, %c0_18, %c16], %31 {strides = array<i32>} : memref<1x8x128xbf16, #tpu.memory_space<vmem>>, vector<1x8x16xbf16>,
    %32 = vector.extract_strided_slice %5 {offsets = [0, 32], sizes = [8, 16], strides = [1, 1]} : vector<8x128xf32> to vector<8x16xf32>
    %33 = vector.extract_strided_slice %32 {offsets = [0, 8], sizes = [8, 8], strides = [1, 1]} : vector<8x16xf32> to vector<8x8xf32>
    %34 = vector.extract_strided_slice %32 {offsets = [0, 0], sizes = [8, 8], strides = [1, 1]} : vector<8x16xf32> to vector<8x8xf32>
    %35 = tpu.concatenate %33, %34 in 1 : vector<8x8xf32>, vector<8x8xf32> -> vector<8x16xf32>
    %36 = arith.mulf %32, %2 : vector<8x16xf32>
    %37 = arith.mulf %35, %3 : vector<8x16xf32>
    %38 = arith.addf %36, %37 : vector<8x16xf32>
    %39 = arith.truncf %38 : vector<8x16xf32> to vector<8x16xbf16>
    %c0_19 = arith.constant 0 : index
    %c0_20 = arith.constant 0 : index
    %c32 = arith.constant 32 : index
    %40 = vector.load %arg8[%c0_19, %c0_20, %c32] : memref<1x8x128xbf16, #tpu.memory_space<vmem>>, vector<1x8x16xbf16>
    %41 = vector.shape_cast %40 : vector<1x8x16xbf16> to vector<8x16xbf16>
    %42 = vector.shape_cast %39 : vector<8x16xbf16> to vector<1x8x16xbf16>
    tpu.vector_store %arg8[%c0_19, %c0_20, %c32], %42 {strides = array<i32>} : memref<1x8x128xbf16, #tpu.memory_space<vmem>>, vector<1x8x16xbf16>,
    %43 = vector.extract_strided_slice %5 {offsets = [0, 48], sizes = [8, 16], strides = [1, 1]} : vector<8x128xf32> to vector<8x16xf32>
    %44 = vector.extract_strided_slice %43 {offsets = [0, 8], sizes = [8, 8], strides = [1, 1]} : vector<8x16xf32> to vector<8x8xf32>
    %45 = vector.extract_strided_slice %43 {offsets = [0, 0], sizes = [8, 8], strides = [1, 1]} : vector<8x16xf32> to vector<8x8xf32>
    %46 = tpu.concatenate %44, %45 in 1 : vector<8x8xf32>, vector<8x8xf32> -> vector<8x16xf32>
    %47 = arith.mulf %43, %2 : vector<8x16xf32>
    %48 = arith.mulf %46, %3 : vector<8x16xf32>
    %49 = arith.addf %47, %48 : vector<8x16xf32>
    %50 = arith.truncf %49 : vector<8x16xf32> to vector<8x16xbf16>
    %c0_21 = arith.constant 0 : index
    %c0_22 = arith.constant 0 : index
    %c48 = arith.constant 48 : index
    %51 = vector.load %arg8[%c0_21, %c0_22, %c48] : memref<1x8x128xbf16, #tpu.memory_space<vmem>>, vector<1x8x16xbf16>
    %52 = vector.shape_cast %51 : vector<1x8x16xbf16> to vector<8x16xbf16>
    %53 = vector.shape_cast %50 : vector<8x16xbf16> to vector<1x8x16xbf16>
    tpu.vector_store %arg8[%c0_21, %c0_22, %c48], %53 {strides = array<i32>} : memref<1x8x128xbf16, #tpu.memory_space<vmem>>, vector<1x8x16xbf16>,
    %54 = vector.extract_strided_slice %5 {offsets = [0, 64], sizes = [8, 16], strides = [1, 1]} : vector<8x128xf32> to vector<8x16xf32>
    %55 = vector.extract_strided_slice %54 {offsets = [0, 8], sizes = [8, 8], strides = [1, 1]} : vector<8x16xf32> to vector<8x8xf32>
    %56 = vector.extract_strided_slice %54 {offsets = [0, 0], sizes = [8, 8], strides = [1, 1]} : vector<8x16xf32> to vector<8x8xf32>
    %57 = tpu.concatenate %55, %56 in 1 : vector<8x8xf32>, vector<8x8xf32> -> vector<8x16xf32>
    %58 = arith.mulf %54, %2 : vector<8x16xf32>
    %59 = arith.mulf %57, %3 : vector<8x16xf32>
    %60 = arith.addf %58, %59 : vector<8x16xf32>
    %61 = arith.truncf %60 : vector<8x16xf32> to vector<8x16xbf16>
    %c0_23 = arith.constant 0 : index
    %c0_24 = arith.constant 0 : index
    %c64 = arith.constant 64 : index
    %62 = vector.load %arg8[%c0_23, %c0_24, %c64] : memref<1x8x128xbf16, #tpu.memory_space<vmem>>, vector<1x8x16xbf16>
    %63 = vector.shape_cast %62 : vector<1x8x16xbf16> to vector<8x16xbf16>
    %64 = vector.shape_cast %61 : vector<8x16xbf16> to vector<1x8x16xbf16>
    tpu.vector_store %arg8[%c0_23, %c0_24, %c64], %64 {strides = array<i32>} : memref<1x8x128xbf16, #tpu.memory_space<vmem>>, vector<1x8x16xbf16>,
    %65 = vector.extract_strided_slice %5 {offsets = [0, 80], sizes = [8, 16], strides = [1, 1]} : vector<8x128xf32> to vector<8x16xf32>
    %66 = vector.extract_strided_slice %65 {offsets = [0, 8], sizes = [8, 8], strides = [1, 1]} : vector<8x16xf32> to vector<8x8xf32>
    %67 = vector.extract_strided_slice %65 {offsets = [0, 0], sizes = [8, 8], strides = [1, 1]} : vector<8x16xf32> to vector<8x8xf32>
    %68 = tpu.concatenate %66, %67 in 1 : vector<8x8xf32>, vector<8x8xf32> -> vector<8x16xf32>
    %69 = arith.mulf %65, %2 : vector<8x16xf32>
    %70 = arith.mulf %68, %3 : vector<8x16xf32>
    %71 = arith.addf %69, %70 : vector<8x16xf32>
    %72 = arith.truncf %71 : vector<8x16xf32> to vector<8x16xbf16>
    %c0_25 = arith.constant 0 : index
    %c0_26 = arith.constant 0 : index
    %c80 = arith.constant 80 : index
    %73 = vector.load %arg8[%c0_25, %c0_26, %c80] : memref<1x8x128xbf16, #tpu.memory_space<vmem>>, vector<1x8x16xbf16>
    %74 = vector.shape_cast %73 : vector<1x8x16xbf16> to vector<8x16xbf16>
    %75 = vector.shape_cast %72 : vector<8x16xbf16> to vector<1x8x16xbf16>
    tpu.vector_store %arg8[%c0_25, %c0_26, %c80], %75 {strides = array<i32>} : memref<1x8x128xbf16, #tpu.memory_space<vmem>>, vector<1x8x16xbf16>,
    %76 = vector.extract_strided_slice %5 {offsets = [0, 96], sizes = [8, 16], strides = [1, 1]} : vector<8x128xf32> to vector<8x16xf32>
    %77 = vector.extract_strided_slice %76 {offsets = [0, 8], sizes = [8, 8], strides = [1, 1]} : vector<8x16xf32> to vector<8x8xf32>
    %78 = vector.extract_strided_slice %76 {offsets = [0, 0], sizes = [8, 8], strides = [1, 1]} : vector<8x16xf32> to vector<8x8xf32>
    %79 = tpu.concatenate %77, %78 in 1 : vector<8x8xf32>, vector<8x8xf32> -> vector<8x16xf32>
    %80 = arith.mulf %76, %2 : vector<8x16xf32>
    %81 = arith.mulf %79, %3 : vector<8x16xf32>
    %82 = arith.addf %80, %81 : vector<8x16xf32>
    %83 = arith.truncf %82 : vector<8x16xf32> to vector<8x16xbf16>
    %c0_27 = arith.constant 0 : index
    %c0_28 = arith.constant 0 : index
    %c96 = arith.constant 96 : index
    %84 = vector.load %arg8[%c0_27, %c0_28, %c96] : memref<1x8x128xbf16, #tpu.memory_space<vmem>>, vector<1x8x16xbf16>
    %85 = vector.shape_cast %84 : vector<1x8x16xbf16> to vector<8x16xbf16>
    %86 = vector.shape_cast %83 : vector<8x16xbf16> to vector<1x8x16xbf16>
    tpu.vector_store %arg8[%c0_27, %c0_28, %c96], %86 {strides = array<i32>} : memref<1x8x128xbf16, #tpu.memory_space<vmem>>, vector<1x8x16xbf16>,
    %87 = vector.extract_strided_slice %5 {offsets = [0, 112], sizes = [8, 16], strides = [1, 1]} : vector<8x128xf32> to vector<8x16xf32>
    %88 = vector.extract_strided_slice %87 {offsets = [0, 8], sizes = [8, 8], strides = [1, 1]} : vector<8x16xf32> to vector<8x8xf32>
    %89 = vector.extract_strided_slice %87 {offsets = [0, 0], sizes = [8, 8], strides = [1, 1]} : vector<8x16xf32> to vector<8x8xf32>
    %90 = tpu.concatenate %88, %89 in 1 : vector<8x8xf32>, vector<8x8xf32> -> vector<8x16xf32>
    %91 = arith.mulf %87, %2 : vector<8x16xf32>
    %92 = arith.mulf %90, %3 : vector<8x16xf32>
    %93 = arith.addf %91, %92 : vector<8x16xf32>
    %94 = arith.truncf %93 : vector<8x16xf32> to vector<8x16xbf16>
    %c0_29 = arith.constant 0 : index
    %c0_30 = arith.constant 0 : index
    %c112 = arith.constant 112 : index
    %95 = vector.load %arg8[%c0_29, %c0_30, %c112] : memref<1x8x128xbf16, #tpu.memory_space<vmem>>, vector<1x8x16xbf16>
    %96 = vector.shape_cast %95 : vector<1x8x16xbf16> to vector<8x16xbf16>
    %97 = vector.shape_cast %94 : vector<8x16xbf16> to vector<1x8x16xbf16>
    tpu.vector_store %arg8[%c0_29, %c0_30, %c112], %97 {strides = array<i32>} : memref<1x8x128xbf16, #tpu.memory_space<vmem>>, vector<1x8x16xbf16>,
    %98 = vector.extract_strided_slice %7 {offsets = [0, 8], sizes = [8, 8], strides = [1, 1]} : vector<8x16xf32> to vector<8x8xf32>
    %99 = vector.extract_strided_slice %7 {offsets = [0, 0], sizes = [8, 8], strides = [1, 1]} : vector<8x16xf32> to vector<8x8xf32>
    %100 = tpu.concatenate %98, %99 in 1 : vector<8x8xf32>, vector<8x8xf32> -> vector<8x16xf32>
    %101 = arith.mulf %7, %2 : vector<8x16xf32>
    %102 = arith.mulf %100, %3 : vector<8x16xf32>
    %103 = arith.addf %101, %102 : vector<8x16xf32>
    %104 = arith.truncf %103 : vector<8x16xf32> to vector<8x16xbf16>
    %c0_31 = arith.constant 0 : index
    %c0_32 = arith.constant 0 : index
    %c0_33 = arith.constant 0 : index
    %105 = vector.load %arg9[%c0_31, %c0_32, %c0_33] : memref<1x8x16xbf16, #tpu.memory_space<vmem>>, vector<1x8x16xbf16>
    %106 = vector.shape_cast %105 : vector<1x8x16xbf16> to vector<8x16xbf16>
    %107 = vector.shape_cast %104 : vector<8x16xbf16> to vector<1x8x16xbf16>
    tpu.vector_store %arg9[%c0_31, %c0_32, %c0_33], %107 {strides = array<i32>} : memref<1x8x16xbf16, #tpu.memory_space<vmem>>, vector<1x8x16xbf16>,
    %108 = arith.truncf %9 : vector<8x16xf32> to vector<8x16xbf16>
    %c0_34 = arith.constant 0 : index
    %c0_35 = arith.constant 0 : index
    %c0_36 = arith.constant 0 : index
    %109 = vector.load %arg10[%c0_34, %c0_35, %c0_36] : memref<1x8x16xbf16, #tpu.memory_space<vmem>>, vector<1x8x16xbf16>
    %110 = vector.shape_cast %109 : vector<1x8x16xbf16> to vector<8x16xbf16>
    %111 = vector.shape_cast %108 : vector<8x16xbf16> to vector<1x8x16xbf16>
    tpu.vector_store %arg10[%c0_34, %c0_35, %c0_36], %111 {strides = array<i32>} : memref<1x8x16xbf16, #tpu.memory_space<vmem>>, vector<1x8x16xbf16>,
    return
  }
  func.func @transform_0(%arg0: i32, %arg1: i32) -> (i32, i32, i32) {
    %c0_i32 = arith.constant 0 : i32
    %c0_i32_0 = arith.constant 0 : i32
    return %arg0, %arg1, %c0_i32 : i32, i32, i32
  }
  func.func @transform_1(%arg0: i32, %arg1: i32) -> (i32, i32) {
    %c0_i32 = arith.constant 0 : i32
    %c0_i32_0 = arith.constant 0 : i32
    %c0_i32_1 = arith.constant 0 : i32
    return %c0_i32, %c0_i32_0 : i32, i32
  }
  func.func @transform_2(%arg0: i32, %arg1: i32) -> (i32, i32) {
    %c0_i32 = arith.constant 0 : i32
    %c0_i32_0 = arith.constant 0 : i32
    %c0_i32_1 = arith.constant 0 : i32
    return %c0_i32, %c0_i32_0 : i32, i32
  }
  func.func @transform_3(%arg0: i32, %arg1: i32) -> (i32, i32) {
    %c0_i32 = arith.constant 0 : i32
    %c0_i32_0 = arith.constant 0 : i32
    %c0_i32_1 = arith.constant 0 : i32
    return %c0_i32, %c0_i32_0 : i32, i32
  }
  func.func @transform_4(%arg0: i32, %arg1: i32) -> (i32, i32) {
    %c0_i32 = arith.constant 0 : i32
    %c0_i32_0 = arith.constant 0 : i32
    return %arg1, %c0_i32 : i32, i32
  }
  func.func @transform_5(%arg0: i32, %arg1: i32) -> (i32, i32) {
    %c0_i32 = arith.constant 0 : i32
    %c0_i32_0 = arith.constant 0 : i32
    return %arg1, %c0_i32 : i32, i32
  }
  func.func @transform_6(%arg0: i32, %arg1: i32) -> (i32, i32, i32) {
    %c0_i32 = arith.constant 0 : i32
    %c0_i32_0 = arith.constant 0 : i32
    return %arg0, %arg1, %c0_i32 : i32, i32, i32
  }
  func.func @transform_7(%arg0: i32, %arg1: i32) -> (i32, i32, i32) {
    %c0_i32 = arith.constant 0 : i32
    %c0_i32_0 = arith.constant 0 : i32
    return %arg0, %arg1, %c0_i32 : i32, i32, i32
  }
  func.func @transform_8(%arg0: i32, %arg1: i32) -> (i32, i32, i32) {
    %c0_i32 = arith.constant 0 : i32
    %c0_i32_0 = arith.constant 0 : i32
    return %arg0, %arg1, %c0_i32 : i32, i32, i32
  }
}

</mosaic_0001>

<bundles_post_ra>
// kernel: tpu_custom_call.1
= control target key start
LH: loop header
LB: loop body
LE: loop exit
PB: predicated region body
PF: predicated region fallthrough
CT: control target
= control target key end

     0   :  { %s1981_s0 = inlined_call_operand.vmem [shape: bf16[2,16,128], index: 0, kind: input, shape index: {}]   ;;  %s1982_s1 = inlined_call_operand.vmem [shape: bf16[128,128], index: 1, kind: input, shape index: {}]   ;;  %s1983_s2 = inlined_call_operand.vmem [shape: bf16[128,16], index: 2, kind: input, shape index: {}]   ;;  %s1984_s3 = inlined_call_operand.vmem [shape: bf16[128,16], index: 3, kind: input, shape index: {}]   ;;  %s1985_s4 = inlined_call_operand.vmem [shape: f32[16,16], index: 4, kind: input, shape index: {}]   ;;  %s1986_s5 = inlined_call_operand.vmem [shape: f32[16,16], index: 5, kind: input, shape index: {}]   ;;  %s1987_s6 = inlined_call_operand.hbm [shape: bf16[2,16,128], index: 6, kind: output, shape index: {0}]   ;;  %s1988_s7 = inlined_call_operand.hbm [shape: bf16[2,16,16], index: 7, kind: output, shape index: {1}]   ;;  %s1989_s8 = inlined_call_operand.hbm [shape: bf16[2,16,16], index: 8, kind: output, shape index: {2}]  }
   0x1   :  { %1997 = sst [smem:[#allocation11_spill]] %s1981_s0 }
   0x2   :  { %1998 = sst [smem:[#allocation12_spill]] %s1982_s1 }
   0x3   :  { %14 = vsyncpa [#allocation3], 0 }
   0x4   :  { %16 = vsyncpa [#allocation3 + $0x1], 0 }
   0x5   :  { %17 = vsyncpa [#allocation5], 0 }
   0x6   :  { %19 = vsyncpa [#allocation5 + $0x1], 0  ;;  %s1548_s27 = smov 0   ;;  %s1550_s28 = smov 0  }
   0x7   :  { %s1552_s29 = smov 0   ;;  %s1554_s30 = smov 0  }
   0x8   :  { %s1556_s9 = smov 0   ;;  %s1558_s10 = smov 0  }
   0x9   :  { %s1560_s11 = smov 0   ;;  %s1562_s12 = smov 0  }
   0xa LB: > { %s1991_s13 = sadd.s32 4294967295, %s1481_s12   ;;  %s1990_s14 = sadd.s32 4294967294, %s1481_s12   ;;  %s1481_s12 = sphi %s1562_s12, %s25_s12   ;;  %s1477_s11 = sphi %s1560_s11, %s2020_s11   ;;  %s1473_s10 = sphi %s1558_s10, %s2019_s10   ;;  %s1469_s9 = sphi %s1556_s9, %s2018_s9   ;;  %s1465_s30 = sphi %s1554_s30, %s2017_s30   ;;  %s1461_s29 = sphi %s1552_s29, %s2016_s29   ;;  %s1457_s28 = sphi %s1550_s28, %s2015_s28   ;;  %s1453_s27 = sphi %s1548_s27, %s2014_s27  }
   0xb   : > { %s34_s15 = sadd.s32 1, %s1473_s10  ;;  %s37_s16 = sadd.s32 1, %s1477_s11 }
   0xc   : > { %p35_p0 = scmp.ge.s32.totalorder %s34_s15, 2  ;;  %p199_p1 = scmp.ne.s32.totalorder %s1461_s29, %s1457_s28 }
   0xd   : > { %p200_p2 = scmp.eq.s32.totalorder %s1991_s13, 3  ;;  %p205_p5 = scmp.ne.s32.totalorder %s1457_s28, %s1453_s27 }
   0xe   : > { %s2022_s15 = smov (%p35_p0, %s34_s15), 0  ;;  %s2024_s16 = smov (!%p35_p0, %s37_s16), %s1477_s11 }
   0xf   : > { %1999 = sst [smem:[#allocation9_spill]] %s2022_s15  ;;  %s185_s17 = ssub.s32 %s1473_s10, %s2022_s15 }
  0x10   : > { %p1601_p3 = por %p200_p2, %p199_p1  ;;  %p39_p4 = scmp.ge.s32.totalorder %s2024_s16, 2 }
  0x11   : > { %p206_p6 = scmp.eq.s32.totalorder %s1990_s14, 3  ;;  %p1075_p7 = scmp.ge.s32.totalorder %s1481_s12, 1 }
  0x12   : > { %s2026_s16 = smov (%p39_p4, %s2024_s16), 0  ;;  %p314_p9 = scmp.lt.s32.totalorder %s1481_s12, 5 }
  0x13   : > { %2001 = sst [smem:[#allocation10_spill]] %s2026_s16  ;;  %p1612_p8 = por %p206_p6, %p205_p5 }
  0x14   : > { %s184_s20 = ssub.s32 %s1477_s11, %s2026_s16  ;;  %s189_s21 = sadd.s32 1, %s1461_s29 }
  0x15   : > { %s186_s22 = sor.u32 %s185_s17, %s184_s20  ;;  %p315_p10 = pnand %p1075_p7, %p314_p9 }
  0x16   : > { %p187_p11 = scmp.eq.s32.totalorder %s186_s22, 0  ;;  %s2003_s1 = sld [smem:[#allocation12_spill]] (!%p315_p10)  ;;  %v1483_v1 = vmov (!%p315_p10), 0.0   ;;  %vm1484_vm0 = vmmov (!%p315_p10), 0   ;;  %v1311_v4 = vld [vmem:[%s1983_s2] sm:$0xff] (!%p315_p10)   ;;  %v1312_v6 = vld [vmem:[%s1983_s2 + $0x8] sm:$0xff] (!%p315_p10)  }
  0x17   : > { %318 = sbr.rel (%p315_p10) target bundleno = 548 (0x224), region = 44  ;;  %1145 = vmatprep.subr.bf16.mxu0 (!%p315_p10), %v1483_v1  ;;  %1165 = vmatprep.subr.bf16.mxu1 (!%p315_p10), %v1483_v1  ;;  %p369_p12 = scmp.lt.s32.totalorder (!%p315_p10), %s1469_s9, 1  ;;  %v1313_v8 = vld [vmem:[%s1983_s2 + $0x10] sm:$0xff] (!%p315_p10)   ;;  %v1314_v10 = vld [vmem:[%s1983_s2 + $0x18] sm:$0xff] (!%p315_p10)   ;;  %v1315_v12 = vld [vmem:[%s1983_s2 + $0x20] sm:$0xff] (!%p315_p10)   ;;  %vm708_vm1 = vcmask (!%p315_p10), 64512  }
  0x18   : > { %s1621_s23 = scalar_select %p187_p11, %s1461_s29, %s189_s21  }
  0x19   : > { %1161 = vmatprep.mubr.msk.bf16.mxu0 (!%p315_p10), %vm1484_vm0, %v1483_v1  ;;  %1181 = vmatprep.mubr.msk.bf16.mxu1 (!%p315_p10), %vm1484_vm0, %v1483_v1  ;;  %p371_p13 = scmp.lt.s32.totalorder (!%p315_p10), %s1465_s30, 1  ;;  %v1316_v14 = vld [vmem:[%s1983_s2 + $0x28] sm:$0xff] (!%p315_p10)   ;;  %s2004_s0 = sld [smem:[#allocation11_spill]] (!%p315_p10)  ;;  %v1317_v16 = vld [vmem:[%s1983_s2 + $0x30] sm:$0xff] (!%p315_p10)   ;;  %v1318_v17 = vld [vmem:[%s1983_s2 + $0x38] sm:$0xff] (!%p315_p10)   ;;  %vm714_vm2 = vcmask (!%p315_p10), 125952  }
  0x1a   : > { %1166 = vmatpush3.bf16.msra.mxu1 (!%p315_p10), %v1311_v4  ;;  %v1319_v18 = vld [vmem:[%s1984_s3] sm:$0xff] (!%p315_p10)   ;;  %v1320_v19 = vld [vmem:[%s1984_s3 + $0x8] sm:$0xff] (!%p315_p10)   ;;  %v1321_v20 = vld [vmem:[%s1984_s3 + $0x10] sm:$0xff] (!%p315_p10)   ;;  %s1486_s20 = smov (!%p315_p10), 120   ;;  %s1488_s16 = smov (!%p315_p10), 104  }
  0x1b   : > { %1167 = vmatprep.subr.bf16.mxu1 (!%p315_p10), %v1483_v1  ;;  %v1322_v21 = vld [vmem:[%s1984_s3 + $0x18] sm:$0xff] (!%p315_p10)   ;;  %v1323_v22 = vld [vmem:[%s1984_s3 + $0x20] sm:$0xff] (!%p315_p10)   ;;  %v1324_v23 = vld [vmem:[%s1984_s3 + $0x28] sm:$0xff] (!%p315_p10)   ;;  %s1489_s21 = smov (!%p315_p10), 40   ;;  %s1491_s25 = smov (!%p315_p10), 8  }
  0x1c   : > { %v1303_v0 = vld [vmem:[%s2003_s1] sm:$0xff] (!%p315_p10)   ;;  %v1304_v2 = vld [vmem:[%s2003_s1 + $0x8] sm:$0xff] (!%p315_p10)   ;;  %v1305_v3 = vld [vmem:[%s2003_s1 + $0x10] sm:$0xff] (!%p315_p10)   ;;  %s1492_s15 = smov (!%p315_p10), 24  }
  0x1d   : > { %1146 = vmatpush3.bf16.msra.mxu0 (!%p315_p10), %v1303_v0  ;;  %v1306_v5 = vld [vmem:[%s2003_s1 + $0x18] sm:$0xff] (!%p315_p10)   ;;  %v1307_v7 = vld [vmem:[%s2003_s1 + $0x20] sm:$0xff] (!%p315_p10)   ;;  %v1308_v9 = vld [vmem:[%s2003_s1 + $0x28] sm:$0xff] (!%p315_p10)  }
  0x1e   : > { %1147 = vmatprep.subr.bf16.mxu0 %v1483_v1  ;;  %s370_s17 = scalar_select %p369_p12, %s1469_s9, 1  ;;  %1168 = vmatpush3.bf16.msra.mxu1 %v1312_v6  ;;  %v1309_v11 = vld [vmem:[%s2003_s1 + $0x30] sm:$0xff]   ;;  %v1310_v13 = vld [vmem:[%s2003_s1 + $0x38] sm:$0xff]  }
  0x1f   : > { %s1662_s22 = scalar_select %p371_p13, %s1465_s30, 1  ;;  %1169 = vmatprep.subr.bf16.mxu1 %v1483_v1  ;;  %v1325_v24 = vld [vmem:[%s1984_s3 + $0x30] sm:$0xff]   ;;  %v1326_v25 = vld [vmem:[%s1984_s3 + $0x38] sm:$0xff]  }
  0x20   : > { %s1079_s26 = sshll.u32 %s370_s17, 1 }
  0x21   : > { %1148 = vmatpush3.bf16.msra.mxu0 %v1304_v2  ;;  %s374_s14 = sadd.s32 %s1079_s26, %s1662_s22  ;;  %s1487_s26 = smov 72  }
  0x22   : > { %1149 = vmatprep.subr.bf16.mxu0 %v1483_v1  ;;  %1170 = vmatpush3.bf16.msra.mxu1 %v1313_v8  ;;  %s1080_s17 = sshll.u32 %s374_s14, 2  ;;  %s1081_s14 = sshll.u32 %s1662_s22, 3 }
  0x23   : > { %1171 = vmatprep.subr.bf16.mxu1 %v1483_v1  ;;  %s376_s24 = scalar_lea.vmem %s2004_s0, %s1080_s17  ;;  %s380_s13 = scalar_lea.vmem %s1985_s4, %s1081_s14 }
  0x24   : > { %v386_v15 = vld [vmem:[%s376_s24] sm:$0xf]  ;;  %s1485_s17 = smov 88   ;;  %s1490_s24 = smov 56  }
  0x25   : > { %1150 = vmatpush3.bf16.msra.mxu0 %v1305_v3  ;;  %v387_v26 = vld [vmem:[%s380_s13] sm:$0xff]  ;;  %s1994_s13 = smov 32   ;;  %s1996_s0 = sand.u32 1, %s1457_s28  }
  0x26   : > { %1151 = vmatprep.subr.bf16.mxu0 %v1483_v1  ;;  %1172 = vmatpush3.bf16.msra.mxu1 %v1314_v10  ;;  %s2005_s22 = smov 32  }
  0x27   : > { %1173 = vmatprep.subr.bf16.mxu1 %v1483_v1 }
  0x29   : > { %1152 = vmatpush3.bf16.msra.mxu0 %v1306_v5 }
  0x2a   : > { %1153 = vmatprep.subr.bf16.mxu0 %v1483_v1  ;;  %1174 = vmatpush3.bf16.msra.mxu1 %v1315_v12 }
  0x2b   : > { %1175 = vmatprep.subr.bf16.mxu1 %v1483_v1 }
  0x2d   : > { %1154 = vmatpush3.bf16.msra.mxu0 %v1307_v7 }
  0x2e   : > { %1155 = vmatprep.subr.bf16.mxu0 %v1483_v1  ;;  %1176 = vmatpush3.bf16.msra.mxu1 %v1316_v14 }
  0x2f   : > { %1177 = vmatprep.subr.bf16.mxu1 %v1483_v1 }
  0x31   : > { %1156 = vmatpush3.bf16.msra.mxu0 %v1308_v9 }
  0x32   : > { %1157 = vmatprep.subr.bf16.mxu0 %v1483_v1  ;;  %1178 = vmatpush3.bf16.msra.mxu1 %v1317_v16 }
  0x33   : > { %1179 = vmatprep.subr.bf16.mxu1 %v1483_v1 }
  0x35   : > { %1158 = vmatpush3.bf16.msra.mxu0 %v1309_v11 }
  0x36   : > { %1159 = vmatprep.subr.bf16.mxu0 %v1483_v1  ;;  %1180 = vmatpush3.bf16.msra.mxu1 %v1318_v17 }
  0x39   : > { %1160 = vmatpush3.bf16.msra.mxu0 %v1310_v13  ;;  %1182 = vmatmul.mubr.bf16.vlgmr.msra.gmra.mrb[0].mxu1 %v386_v15 }
  0x3a   : > { %1185 = vmatprep.subr.bf16.mxu0 %v1483_v1 }
  0x3c   : > { %1162 = vmatmul.mubr.bf16.vlgmr.msra.gmra.mrb[0].mxu0 %v386_v15 }
  0x3d   : > { %1201 = vmatprep.mubr.msk.bf16.mxu0 %vm1484_vm0, %v1483_v1  ;;  %1186 = vmatpush3.bf16.msra.mxu0 %v1319_v18 }
  0x3e   : > { %1187 = vmatprep.subr.bf16.mxu0 %v1483_v1 }
  0x41   : > { %1188 = vmatpush3.bf16.msra.mxu0 %v1320_v19 }
  0x42   : > { %1189 = vmatprep.subr.bf16.mxu0 %v1483_v1 }
  0x45   : > { %1190 = vmatpush3.bf16.msra.mxu0 %v1321_v20 }
  0x46   : > { %1191 = vmatprep.subr.bf16.mxu0 %v1483_v1 }
  0x49   : > { %1192 = vmatpush3.bf16.msra.mxu0 %v1322_v21 }
  0x4a   : > { %1193 = vmatprep.subr.bf16.mxu0 %v1483_v1 }
  0x4d   : > { %1194 = vmatpush3.bf16.msra.mxu0 %v1323_v22 }
  0x4e   : > { %1195 = vmatprep.subr.bf16.mxu0 %v1483_v1 }
  0x51   : > { %1196 = vmatpush3.bf16.msra.mxu0 %v1324_v23 }
  0x52   : > { %1197 = vmatprep.subr.bf16.mxu0 %v1483_v1 }
  0x55   : > { %1198 = vmatpush3.bf16.msra.mxu0 %v1325_v24 }
  0x56   : > { %1199 = vmatprep.subr.bf16.mxu0 %v1483_v1 }
  0x59   : > { %1200 = vmatpush3.bf16.msra.mxu0 %v1326_v25 }
  0x5c   : > { %1202 = vmatmul.mubr.bf16.vlgmr.msra.gmra.mrb[4].mxu0 %v386_v15 }
 0x10c   : > { %v591_v32 = vpop.f32.mrb[0].mxu1 }
 0x10d   : > { %v1752_v33 = vmul.f32 %v591_v32, %v387_v26  ;;  %v1183_v34 = vpop.f32.mrb[1].mxu1 }
 0x10e   : > { %v594_v35 = vpop.f32.mrb[2].mxu1 }
 0x10f   : > { %v1741_v27 = vpop.f32.mrb[0].mxu0  ;;  %v1184_v36 = vpop.f32.mrb[3].mxu1 }
 0x110   : > { %734 = vrot.lane.b32.xlu1 %v1741_v27, %s1485_s17  ;;  %702 = vrot.lane.b32.xlu0 %v1741_v27, %s1486_s20  ;;  %v1163_v28 = vpop.f32.mrb[1].mxu0  ;;  %v1746_v29 = vmul.f32 %v1741_v27, %v387_v26  ;;  %s1494_s17 = smov 16  }
 0x111   : > { %v490_v30 = vpop.f32.mrb[2].mxu0 }
 0x112   : > { %v1164_v31 = vpop.f32.mrb[3].mxu0 }
 0x114   : > { %751 = vrot.lane.b32.xlu1 %v1741_v27, %s1487_s26  ;;  %716 = vrot.lane.b32.xlu0 %v1741_v27, %s1488_s16  ;;  %s1995_s26 = smov 48   ;;  %s1496_s16 = smov 64  }
 0x118   : > { %785 = vrot.lane.b32.xlu1 %v1741_v27, %s1489_s21  ;;  %768 = vrot.lane.b32.xlu0 %v1741_v27, %s1490_s24  ;;  %s1497_s21 = smov 80   ;;  %s1498_s24 = smov 96  }
 0x11c   : > { %705 = vrot.lane.b32.xlu1 %v1741_v27, %s1491_s25  ;;  %802 = vrot.lane.b32.xlu0 %v1741_v27, %s1492_s15  ;;  %s1499_s15 = smov 112  }
 0x120   : > { %738 = vrot.lane.b32.xlu1 %v387_v26, %s1994_s13  ;;  %721 = vrot.lane.b32.xlu0 %v387_v26, %s1494_s17 }
 0x124   : > { %755 = vrot.lane.b32.xlu1 %v387_v26, %s1995_s26  ;;  %834 = vrot.lane.b32.xlu0 %v591_v32, %s1486_s20  ;;  %s384_s26 = scalar_lea.vmem %s1986_s5, %s1081_s14  ;;  %s1783_s14 = sshll.u32 %s1996_s0, 2 }
 0x125   : > { %v1767_v39 = vld [vmem:[%s384_s26] sm:$0xff]  ;;  %s2006_s20 = smov 48   ;;  %s1803_s13 = scalar_lea.vmem [#allocation2], %s1783_s14 }
 0x128   : > { %772 = vrot.lane.b32.xlu1 %v387_v26, %s1496_s16 }
 0x12c   : > { %789 = vrot.lane.b32.xlu1 %v387_v26, %s1497_s21 }
 0x12f   : > { %v695_v56 = vpop.f32.mrb[4].mxu0 }
 0x130   : > { %806 = vrot.lane.b32.xlu1 %v387_v26, %s1498_s24  ;;  %v1203_v58 = vpop.f32.mrb[5].mxu0  ;;  %v846_v0 = vpack.c.bf16 %v695_v56, %v695_v56 }
 0x131   : > { %v698_v1 = vpop.f32.mrb[6].mxu0 }
 0x132   : > { %v1204_v4 = vpop.f32.mrb[7].mxu0 }
 0x134   : > { %820 = vrot.lane.b32.xlu1 %v387_v26, %s1499_s15 }
 0x138   : > { %837 = vrot.lane.b32.xlu1 %v591_v32, %s1491_s25  ;;  %s368_s25 = scalar_lea.vmem [#allocation6], %s1783_s14 }
 0x139   : > { %847 = vst.msk [vmem:[%s368_s25] sm:$0xf] %vm714_vm2, %v846_v0 }
 0x182   : > { %v735_v37 = vpop.permute.xlu1 %734  ;;  %v703_v38 = vpop.permute.xlu0 %702 }
 0x186   : > { %v752_v40 = vpop.permute.xlu1 %751  ;;  %v717_v41 = vpop.permute.xlu0 %716 }
 0x187   : > { %v719_v42 = vsel %vm708_vm1, %v717_v41, %v703_v38  ;;  %v737_v44 = vsel %vm708_vm1, %v735_v37, %v717_v41  ;;  %v754_v48 = vsel %vm708_vm1, %v752_v40, %v735_v37 }
 0x188   : > { %v725_v43 = vmul.f32 %v719_v42, %v1767_v39  ;;  %v742_v47 = vmul.f32 %v737_v44, %v1767_v39  ;;  %v759_v53 = vmul.f32 %v754_v48, %v1767_v39 }
 0x18a   : > { %v786_v45 = vpop.permute.xlu1 %785  ;;  %727 = vrot.lane.b32.xlu0 %v725_v43, %s1494_s17  ;;  %v769_v46 = vpop.permute.xlu0 %768  ;;  %s1110_s17 = sshll.u32 %s1469_s9, 1  ;;  %s904_s9 = sshll.u32 %s368_s25, 4  ;;  %s1855_s9 = int_to_ptr.vmem [resolvable:$true] %s904_s9 }
 0x18b   : > { %v771_v57 = vsel %vm708_vm1, %v769_v46, %v752_v40  ;;  %v788_v5 = vsel %vm708_vm1, %v786_v45, %v769_v46  ;;  %s870_s26 = sadd.s32 %s1465_s30, %s1110_s17  ;;  %s1500_s30 = smov [#allocation4]  }
 0x18c   : > { %v776_v2 = vmul.f32 %v771_v57, %v1767_v39  ;;  %v793_v8 = vmul.f32 %v788_v5, %v1767_v39 }
 0x18e   : > { %v706_v49 = vpop.permute.xlu1 %705  ;;  %744 = vrot.lane.b32.xlu0 %v742_v47, %s2005_s22  ;;  %v803_v50 = vpop.permute.xlu0 %802 }
 0x18f   : > { %v709_v51 = vsel %vm708_vm1, %v703_v38, %v706_v49  ;;  %v819_v52 = vsel %vm708_vm1, %v706_v49, %v803_v50  ;;  %v805_v9 = vsel %vm708_vm1, %v803_v50, %v786_v45 }
 0x190   : > { %v711_v54 = vmul.f32 %v709_v51, %v1767_v39  ;;  %v824_v55 = vmul.f32 %v819_v52, %v1767_v39  ;;  %v810_v12 = vmul.f32 %v805_v9, %v1767_v39 }
 0x192   : > { %v712_v59 = vadd.f32 %v711_v54, %v1746_v29  ;;  %v739_v60 = vpop.permute.xlu1 %738  ;;  %761 = vrot.lane.b32.xlu0 %v759_v53, %s2006_s20  ;;  %826 = vrot.lane.b32.xlu1 %v824_v55, %s1499_s15  ;;  %v722_v61 = vpop.permute.xlu0 %721  ;;  %s361_s15 = scalar_lea.vmem [#allocation4], %s1783_s14  ;;  %s1331_s20 = sshll.u32 %s1500_s30, 4  ;;  %s1332_s20 = int_to_ptr.vmem [resolvable:$false] %s1331_s20 }
 0x193   : > { %v1790_v62 = vmul.f32 %v739_v60, %v1741_v27  ;;  %v1793_v63 = vmul.f32 %v722_v61, %v1741_v27  ;;  %s889_s22 = sshll.u32 %s361_s15, 4  ;;  %s1333_s1 = scalar_lea.vmem %s1332_s20, 128  ;;  %s1847_s22 = int_to_ptr.vmem [resolvable:$true] %s889_s22 }
 0x194   : > { %v713_v3 = vpack.c.bf16 %v712_v59, %v712_v59  ;;  %s1327_s25 = scalar_lea.vmem %s1847_s22, 64  ;;  %p1334_p4 = scmp.lt.s32.totalorder %s1847_s22, %s1332_s20 }
 0x195   : > { %p1328_p0 = scmp.ne.s32.totalorder %s1847_s22, %s1327_s25  ;;  %p1335_p5 = scmp.lt.s32.totalorder %s1333_s1, %s1327_s25 }
 0x196   : > { %v756_v6 = vpop.permute.xlu1 %755  ;;  %778 = vrot.lane.b32.xlu0 %v776_v2, %s1496_s16  ;;  %715 = vst.msk [vmem:[%s1803_s13] sm:$0xf] %vm714_vm2, %v713_v3  ;;  %v835_v19 = vpop.permute.xlu0 %834  ;;  %s2007_s16 = sadd.s32 4294967295, %s1481_s12  }
 0x197   : > { %v1808_v7 = vmul.f32 %v756_v6, %v1741_v27  ;;  %p1329_p1 = pnand %p1328_p0, %p1601_p3  ;;  %p1336_p6 = por %p1335_p5, %p1334_p4 }
 0x199   : > { %p1330_p2 = pneg %p1329_p1 }
 0x19a   : > { %v773_v10 = vpop.permute.xlu1 %772  ;;  %795 = vrot.lane.b32.xlu0 %v793_v8, %s1497_s21  ;;  %s1833_s21 = sand.u32 1, %s2007_s16  }
 0x19b   : > { %v1814_v11 = vmul.f32 %v773_v10, %v1741_v27  ;;  %p1337_p7 = pnand %p1336_p6, %p1330_p2 }
 0x19e   : > { %v790_v13 = vpop.permute.xlu1 %789  ;;  %812 = vrot.lane.b32.xlu0 %v810_v12, %s1498_s24  ;;  %s1835_s24 = sshll.u32 %s870_s26, 6 }
 0x19f   : > { %v1819_v14 = vmul.f32 %v790_v13, %v1741_v27  ;;  %s1845_s17 = scalar_lea.hbm %s1988_s7, %s1835_s24  ;;  %s1853_s26 = scalar_lea.hbm %s1989_s8, %s1835_s24 }
 0x1a2   : > { %v807_v15 = vpop.permute.xlu1 %806 }
 0x1a3   : > { %v1822_v16 = vmul.f32 %v807_v15, %v1741_v27 }
 0x1a6   : > { %v821_v17 = vpop.permute.xlu1 %820 }
 0x1a7   : > { %v1825_v18 = vmul.f32 %v821_v17, %v1741_v27 }
 0x1aa   : > { %v838_v20 = vpop.permute.xlu1 %837 }
 0x1ab   : > { %v840_v21 = vsel %vm708_vm1, %v835_v19, %v838_v20 }
 0x1ac   : > { %v842_v22 = vmul.f32 %v840_v21, %v1767_v39 }
 0x1ae   : > { %v843_v23 = vadd.f32 %v842_v22, %v1752_v33 }
 0x1b0   : > { %v844_v24 = vpack.c.bf16 %v843_v23, %v843_v23 }
 0x1b2   : > { %845 = vst.msk [vmem:[%s361_s15] sm:$0xf] %vm714_vm2, %v844_v24 }
 0x1b3   : > { %1340 = shalt.err (!%p1337_p7)
}
 0x1b4   : > { %s1341_s0 = scalar_lea.hbm %s1845_s17, 64  ;;  %s1345_s30 = scalar_lea.hbm %s1988_s7, 256 }
 0x1b5   : > { %p1342_p9 = scmp.ne.s32.totalorder %s1845_s17, %s1341_s0  ;;  %p1346_p12 = scmp.lt.u32.totalorder %s1845_s17, %s1988_s7 }
 0x1b6   : > { %p1347_p13 = scmp.lt.u32.totalorder %s1345_s30, %s1341_s0  ;;  %p1349_p1 = scmp.lt.u32.totalorder %s1341_s0, %s1845_s17 }
 0x1b7   : > { %p1343_p10 = pnand %p1342_p9, %p1601_p3 }
 0x1b8   : > { %p1348_p0 = por %p1347_p13, %p1346_p12 }
 0x1b9   : > { %p1344_p11 = pneg %p1343_p10 }
 0x1ba   : > { %p1350_p2 = por %p1349_p1, %p1348_p0 }
 0x1bc   : > { %p1351_p4 = pnand %p1350_p2, %p1344_p11 }
 0x1be   : > { %1354 = shalt.err (!%p1351_p4)
}
 0x1bf   : > { %s2008_s1 = scalar_lea.sflag [#allocation5], %s1833_s21  ;;  %s1355_s25 = scalar_lea.vmem %s1855_s9, 64 }
 0x1c0   : > { %1206 = dma.vmem_to_hbm [thread:$0]  (%p1601_p3), %s1847_s22, 64, %s1845_s17, %s2008_s1  }
 0x1c1   : > { %p1356_p5 = scmp.ne.s32.totalorder %s1855_s9, %s1355_s25  ;;  %s1501_s14 = smov [#allocation6]  }
 0x1c2   : > { %s1359_s0 = sshll.u32 %s1501_s14, 4  ;;  %s1360_s0 = int_to_ptr.vmem [resolvable:$false] %s1359_s0 }
 0x1c3   : > { %p1357_p6 = pnand %p1356_p5, %p1601_p3  ;;  %s1361_s15 = scalar_lea.vmem %s1360_s0, 128 }
 0x1c4   : > { %p1362_p9 = scmp.lt.s32.totalorder %s1855_s9, %s1360_s0  ;;  %p1363_p10 = scmp.lt.s32.totalorder %s1361_s15, %s1355_s25 }
 0x1c5   : > { %p1358_p7 = pneg %p1357_p6 }
 0x1c6   : > { %p1364_p11 = por %p1363_p10, %p1362_p9 }
 0x1c8   : > { %p1365_p12 = pnand %p1364_p11, %p1358_p7 }
 0x1ca   : > { %1368 = shalt.err (!%p1365_p12)
}
 0x1cb   : > { %s1369_s22 = scalar_lea.hbm %s1853_s26, 64  ;;  %s1373_s30 = scalar_lea.hbm %s1989_s8, 256 }
 0x1cc   : > { %p1370_p13 = scmp.ne.s32.totalorder %s1853_s26, %s1369_s22  ;;  %p1374_p2 = scmp.lt.u32.totalorder %s1853_s26, %s1989_s8 }
 0x1cd   : > { %p1375_p4 = scmp.lt.u32.totalorder %s1373_s30, %s1369_s22  ;;  %p1377_p6 = scmp.lt.u32.totalorder %s1369_s22, %s1853_s26 }
 0x1ce   : > { %p1371_p0 = pnand %p1370_p13, %p1601_p3 }
 0x1cf   : > { %p1376_p5 = por %p1375_p4, %p1374_p2 }
 0x1d0   : > { %p1372_p1 = pneg %p1371_p0 }
 0x1d1   : > { %p1378_p7 = por %p1377_p6, %p1376_p5 }
 0x1d3   : > { %p1379_p9 = pnand %p1378_p7, %p1372_p1 }
 0x1d5   : > { %1382 = shalt.err (!%p1379_p9)
}
 0x1d6   : > { %s2009_s25 = scalar_lea.sflag [#allocation5], %s1833_s21  ;;  %vm732_vm3 = vcmask 257152   ;;  %vm749_vm4 = vcmask 388352   ;;  %vm766_vm5 = vcmask 519552   ;;  %vm783_vm6 = vcmask 650752   ;;  %s874_s21 = sshll.u32 %s1803_s13, 4  ;;  %s1924_s21 = int_to_ptr.vmem [resolvable:$true] %s874_s21 }
 0x1d7   : > { %1207 = dma.vmem_to_hbm [thread:$0]  (%p1601_p3), %s1855_s9, 64, %s1853_s26, %s2009_s25   ;;  %vm800_vm7 = vcmask 781952   ;;  %vm817_vm8 = vcmask 913152   ;;  %vm831_vm9 = vcmask 1044352  }
 0x1d8   : > { %s1922_s14 = scalar_lea.hbm %s1987_s6, %s1835_s24  ;;  %s2010_s0 = sand.u32 1, %s1457_s28  }
 0x1d9   : > { %s849_s15 = scalar_lea.sflag [#allocation3], %s2010_s0  ;;  %s1383_s22 = scalar_lea.vmem %s1924_s21, 64 }
 0x1da   : > { %p1384_p10 = scmp.ne.s32.totalorder %s1924_s21, %s1383_s22  ;;  %s1502_s17 = smov [#allocation2]  }
 0x1db   : > { %s1387_s16 = sshll.u32 %s1502_s17, 4  ;;  %s1388_s16 = int_to_ptr.vmem [resolvable:$false] %s1387_s16 }
 0x1dc   : > { %p1385_p11 = pnand %p1384_p10, %p1601_p3  ;;  %s1389_s30 = scalar_lea.vmem %s1388_s16, 128 }
 0x1dd   : > { %p1390_p13 = scmp.lt.s32.totalorder %s1924_s21, %s1388_s16  ;;  %p1391_p0 = scmp.lt.s32.totalorder %s1389_s30, %s1383_s22 }
 0x1de   : > { %p1386_p12 = pneg %p1385_p11 }
 0x1df   : > { %p1392_p1 = por %p1391_p0, %p1390_p13 }
 0x1e1   : > { %p1393_p2 = pnand %p1392_p1, %p1386_p12 }
 0x1fc   : > { %v728_v25 = vpop.permute.xlu0 %727 }
 0x1fd   : > { %v730_v26 = vadd.f32 %v728_v25, %v1793_v63 }
 0x1ff   : > { %v731_v27 = vpack.c.bf16 %v730_v26, %v730_v26 }
 0x200   : > { %v745_v28 = vpop.permute.xlu0 %744 }
 0x201   : > { %v747_v29 = vadd.f32 %v745_v28, %v1790_v62  ;;  %733 = vst.msk [vmem:[%s1803_s13] sm:$0xf] %vm732_vm3, %v731_v27 }
 0x203   : > { %v748_v30 = vpack.c.bf16 %v747_v29, %v747_v29 }
 0x204   : > { %v762_v31 = vpop.permute.xlu0 %761  ;;  %v827_v38 = vpop.permute.xlu1 %826 }
 0x205   : > { %v764_v32 = vadd.f32 %v762_v31, %v1808_v7  ;;  %750 = vst.msk [vmem:[%s1803_s13] sm:$0xf] %vm749_vm4, %v748_v30  ;;  %v829_v41 = vadd.f32 %v827_v38, %v1825_v18 }
 0x207   : > { %v765_v33 = vpack.c.bf16 %v764_v32, %v764_v32  ;;  %v830_v45 = vpack.c.bf16 %v829_v41, %v829_v41 }
 0x208   : > { %v779_v34 = vpop.permute.xlu0 %778 }
 0x209   : > { %v781_v35 = vadd.f32 %v779_v34, %v1814_v11  ;;  %767 = vst.msk [vmem:[%s1803_s13] sm:$0xf] %vm766_vm5, %v765_v33 }
 0x20b   : > { %v782_v36 = vpack.c.bf16 %v781_v35, %v781_v35 }
 0x20c   : > { %v796_v37 = vpop.permute.xlu0 %795 }
 0x20d   : > { %v798_v39 = vadd.f32 %v796_v37, %v1819_v14  ;;  %784 = vst.msk [vmem:[%s1803_s13] sm:$0xf] %vm783_vm6, %v782_v36 }
 0x20f   : > { %v799_v40 = vpack.c.bf16 %v798_v39, %v798_v39 }
 0x210   : > { %v813_v42 = vpop.permute.xlu0 %812 }
 0x211   : > { %v815_v43 = vadd.f32 %v813_v42, %v1822_v16  ;;  %801 = vst.msk [vmem:[%s1803_s13] sm:$0xf] %vm800_vm7, %v799_v40 }
 0x213   : > { %v816_v44 = vpack.c.bf16 %v815_v43, %v815_v43 }
 0x215   : > { %818 = vst.msk [vmem:[%s1803_s13] sm:$0xf] %vm817_vm8, %v816_v44 }
 0x216   : > { %832 = vst.msk [vmem:[%s1803_s13] sm:$0xf] %vm831_vm9, %v830_v45 }
 0x217   : > { %1396 = shalt.err (!%p1393_p2)
}
 0x218   : > { %s1397_s13 = scalar_lea.hbm %s1922_s14, 64  ;;  %s1401_s1 = scalar_lea.hbm %s1987_s6, 256 }
 0x219   : > { %p1398_p4 = scmp.ne.s32.totalorder %s1922_s14, %s1397_s13  ;;  %p1402_p7 = scmp.lt.u32.totalorder %s1922_s14, %s1987_s6 }
 0x21a   : > { %p1403_p9 = scmp.lt.u32.totalorder %s1401_s1, %s1397_s13  ;;  %p1405_p11 = scmp.lt.u32.totalorder %s1397_s13, %s1922_s14 }
 0x21b   : > { %p1399_p5 = pnand %p1398_p4, %p1601_p3 }
 0x21c   : > { %p1404_p10 = por %p1403_p9, %p1402_p7 }
 0x21d   : > { %p1400_p6 = pneg %p1399_p5 }
 0x21e   : > { %p1406_p12 = por %p1405_p11, %p1404_p10 }
 0x220   : > { %p1407_p13 = pnand %p1406_p12, %p1400_p6 }
 0x222   : > { %1410 = shalt.err (!%p1407_p13)
}
 0x223   : > { %1205 = dma.vmem_to_hbm [thread:$0]  (%p1601_p3), %s1924_s21, 64, %s1922_s14, %s849_s15  }
 0x224 PF: > { %p1221_p0 = scmp.ge.s32.totalorder %s1481_s12, 2  ;;  %s916_s26 = sand.u32 1, %s1453_s27  }
 0x225   : > { %s917_s0 = scalar_lea.sflag [#allocation3], %s916_s26 }
 0x226   : > { %p1212_p1 = pnand %p1221_p0, %p1612_p8 }
 0x228   : > { %1444 = dma.done.wait (!%p1212_p1), %s917_s0, 64  }
 0x229   : > { %1446 = vsyncadd (!%p1212_p1), %s917_s0, 4294967232  ;;  %s2011_s22 = sadd.s32 4294967294, %s1481_s12  }
 0x22a   : > { %s925_s17 = sand.u32 1, %s2011_s22  }
 0x22b   : > { %s926_s16 = scalar_lea.sflag [#allocation5], %s925_s17 }
 0x22c   : > { %1448 = dma.done.wait (!%p1212_p1), %s926_s16, 128  }
 0x22d   : > { %1450 = vsyncadd (!%p1212_p1), %s926_s16, 4294967168  ;;  %s25_s12 = sadd.s32 1, %s1481_s12   ;;  %s2012_s18 = sld [smem:[#allocation9_spill]] }
 0x22e   : > { %p22_p3 = scmp.ge.s32.totalorder %s25_s12, 6   ;;  %s2013_s19 = sld [smem:[#allocation10_spill]] }
 0x22f   : > { %s2014_s27 = smov %s1457_s28  ;;  %s2015_s28 = smov %s1461_s29 }
 0x230   : > { %s2016_s29 = smov %s1621_s23  ;;  %s2017_s30 = smov %s1473_s10 }
 0x231   : > { %s2018_s9 = smov %s1477_s11  ;;  %24 = sbr.rel (!%p22_p3) target bundleno = 10 (0xa), region = 117 }
 0x233   : > { %s2019_s10 = smov %s2012_s18 }
 0x234   : > { %s2020_s11 = smov %s2013_s19 }
 0x238   :  { %940 = vsyncpa [#allocation3], 1 }
 0x239   :  { %942 = vsyncpa [#allocation3 + $0x1], 1 }
 0x23a   :  { %943 = vsyncpa [#allocation5], 1 }
 0x23b   :  { %945 = vsyncpa [#allocation5 + $0x1], 1 }

</bundles_post_ra>
